<compile_context>
chip_gen: v7x
topology: tpu7x:2x2x1
jax: 0.10.0
libtpu: 0.0.40
codegen_flags: <defaults>
</compile_context>

<pallas_src>
import functools
import math

import jax
import jax.numpy as jnp
from jax.experimental import pallas as pl
from jax.experimental.pallas import tpu as pltpu

_LANE = 128
# Per-block budget measured in f32-equivalent bytes (so bf16/int8 blocks leave room
# for their in-kernel f32 temporaries).  ~4 MiB sits on the HBM roofline plateau and
# amortizes per-grid-step overhead on v7x while double-buffered in+out (+ headroom)
# fits comfortably under the explicit 32 MiB scoped-VMEM limit on all generations.
_TARGET_BLOCK_BYTES_F32EQ = 4 * 1024 * 1024
_VMEM_LIMIT_BYTES = 32 * 1024 * 1024


def _sine_kernel(x_ref, o_ref, *, w0):
    # Compute in f32: keeps argument reduction accurate for bf16 inputs with large w0.
    # TODO(synk): on v6e/v7x a bf16 sin evaluation (keeping w0*x in f32) could ~2x
    # VALU throughput for bf16 inputs if the kernel turns out VALU-bound; kept f32
    # here for SIREN accuracy.
    x = x_ref[...].astype(jnp.float32)
    o_ref[...] = jnp.sin(w0 * x).astype(o_ref.dtype)


def _round_up(x, m):
    return (x + m - 1) // m * m


def _sublane_multiple(itemsize):
    # Native sublane packing: f32 -> 8, bf16 -> 16, int8/fp8 -> 32.
    return 8 * max(1, 4 // itemsize)


def _tile_sizes(rows, cols, itemsize):
    """Pick (tile_rows, tile_cols) near the block-byte target, bounded on both axes."""
    sub = _sublane_multiple(itemsize)
    elem_bytes = max(itemsize, 4)  # account for f32 intermediates in-kernel

    # Column tile: either the full (small) extent, or a bounded multiple of 128.
    if cols <= _LANE:
        tile_cols = cols
    else:
        max_cols = max(
            _LANE,
            (_TARGET_BLOCK_BYTES_F32EQ // (sub * elem_bytes)) // _LANE * _LANE,
        )
        tile_cols = min((cols // _LANE) * _LANE, max_cols)

    # Row tile: multiple of the sublane packing, filling out the block budget.
    if rows <= sub:
        tile_rows = rows
    else:
        row_bytes = tile_cols * elem_bytes
        tile_rows = max(sub, (_TARGET_BLOCK_BYTES_F32EQ // row_bytes) // sub * sub)
        tile_rows = min(tile_rows, _round_up(rows, sub))

    # v7x megacore: prefer >= 2 grid steps so both TensorCores get work.
    if pl.cdiv(rows, tile_rows) * pl.cdiv(cols, tile_cols) < 2:
        if rows > sub:
            tile_rows = _round_up(pl.cdiv(rows, 2), sub)
        elif cols > _LANE and tile_cols > _LANE:
            tile_cols = _round_up(pl.cdiv(cols, 2), _LANE)
    return tile_rows, tile_cols


def _run_2d(x2d, w0, out_dtype):
    rows, cols = x2d.shape
    itemsize = jnp.dtype(x2d.dtype).itemsize
    tile_rows, tile_cols = _tile_sizes(rows, cols, itemsize)
    grid = (pl.cdiv(rows, tile_rows), pl.cdiv(cols, tile_cols))  # ragged blocks masked
    return pl.pallas_call(
        functools.partial(_sine_kernel, w0=float(w0)),
        out_shape=jax.ShapeDtypeStruct((rows, cols), out_dtype),
        grid_spec=pltpu.PrefetchScalarGridSpec(
            num_scalar_prefetch=0,
            grid=grid,
            in_specs=[pl.BlockSpec((tile_rows, tile_cols), lambda i, j: (i, j))],
            out_specs=pl.BlockSpec((tile_rows, tile_cols), lambda i, j: (i, j)),
        ),
        compiler_params=pltpu.CompilerParams(
            dimension_semantics=("parallel", "parallel"),
            vmem_limit_bytes=_VMEM_LIMIT_BYTES,
        ),
    )(x2d)


def sine(x, w0=1.0):
    """Pallas equivalent of Sine.forward: sin(w0 * x). Preserves shape; floating
    dtypes are preserved, integer inputs promote to float32 (torch.sin semantics)."""
    out_dtype = x.dtype if jnp.issubdtype(x.dtype, jnp.floating) else jnp.float32
    orig_shape = x.shape
    n = x.size
    if n == 0:
        return x.astype(out_dtype)
    if x.ndim == 0:
        return jnp.sin(jnp.float32(w0) * x.astype(jnp.float32)).astype(out_dtype)

    # Build a copy-free 2-D view (merging contiguous dims / exact-multiple reshapes
    # are layout-preserving).  Ragged shapes are handled by Pallas block masking,
    # never by jnp.pad / slicing (which would double/triple HBM traffic).
    if x.ndim == 1:
        if n % _LANE == 0:
            x2d = x.reshape(n // _LANE, _LANE)
        else:
            x2d = x.reshape(1, n)  # column-tiled, ragged final block masked
    else:
        cols = x.shape[-1]
        rows = n // cols
        if cols % _LANE != 0 and n % _LANE == 0:
            # Trailing dim not lane-aligned but total is: flatten to a lane-dense slab.
            x2d = x.reshape(n // _LANE, _LANE)
        else:
            x2d = x.reshape(rows, cols)

    out2d = _run_2d(x2d, w0, out_dtype)
    return out2d.reshape(orig_shape)


if __name__ == "__main__":
    key = jax.random.PRNGKey(0)
    k1, k2, k3, k4 = jax.random.split(key, 4)
    w0 = 30.0  # common SIREN frequency; module default is 1.0

    ok = True

    # SIREN-style activation (batch, hidden), lane-aligned hidden.
    x1 = jax.random.normal(k1, (8, 256), dtype=jnp.float32)
    out1 = jax.block_until_ready(sine(x1, w0=w0))
    ref1 = jnp.sin(w0 * x1)
    ok &= out1.shape == x1.shape and out1.dtype == x1.dtype
    ok &= bool(jnp.allclose(out1, ref1, atol=1e-5, rtol=1e-5))

    # 4D input, trailing dim not lane-aligned, total divisible by 128 -> flatten path.
    x2 = jax.random.normal(k2, (2, 4, 16, 16), dtype=jnp.float32)
    out2 = jax.block_until_ready(sine(x2, w0=w0))
    ref2 = jnp.sin(w0 * x2)
    ok &= out2.shape == x2.shape and out2.dtype == x2.dtype
    ok &= bool(jnp.allclose(out2, ref2, atol=1e-5, rtol=1e-5))

    # bf16 input: kernel computes in f32, casts back.
    x3 = jax.random.normal(k3, (8, 32), dtype=jnp.bfloat16)
    out3 = jax.block_until_ready(sine(x3, w0=w0))
    ref3 = jnp.sin(w0 * x3.astype(jnp.float32)).astype(jnp.bfloat16)
    ok &= out3.shape == x3.shape and out3.dtype == x3.dtype
    ok &= bool(jnp.allclose(out3.astype(jnp.float32), ref3.astype(jnp.float32),
                            atol=1e-2, rtol=1e-2))

    # Fully ragged shape (neither dim lane/sublane aligned, total % 128 != 0):
    # exercised with in-kernel masking, no pad/slice copies.
    x4 = jax.random.normal(k4, (20, 144), dtype=jnp.float32)
    out4 = jax.block_until_ready(sine(x4, w0=w0))
    ref4 = jnp.sin(w0 * x4)
    ok &= out4.shape == x4.shape and out4.dtype == x4.dtype
    ok &= bool(jnp.allclose(out4, ref4, atol=1e-5, rtol=1e-5))

    # Integer input promotes to float32 (torch.sin semantics).
    x5 = jnp.arange(12, dtype=jnp.int32).reshape(3, 4)
    out5 = jax.block_until_ready(sine(x5, w0=0.1))
    ref5 = jnp.sin(0.1 * x5.astype(jnp.float32))
    ok &= out5.shape == x5.shape and out5.dtype == jnp.float32
    ok &= bool(jnp.allclose(out5, ref5, atol=1e-5, rtol=1e-5))

    if ok:
        print("KERNEL_OK")
    else:
        print("KERNEL_FAIL")
</pallas_src>

<mosaic_0001>
module attributes {stable_mosaic.version = 11 : i64} {
  func.func @_sine_kernel(%arg0: i32, %arg1: i32, %arg2: memref<8x128xf32, #tpu.memory_space<vmem>>, %arg3: memref<8x128xf32, #tpu.memory_space<vmem>>) attributes {dimension_semantics = [#tpu.dimension_semantics<parallel>, #tpu.dimension_semantics<parallel>], iteration_bounds = array<i64: 1, 2>, scalar_prefetch = 0 : i64, scratch_operands = 0 : i64, tpu.core_type = #tpu.core_type<tc>, window_params = [{transform_indices = @transform_0, window_bounds = array<i64: 8, 128>}, {transform_indices = @transform_1, window_bounds = array<i64: 8, 128>}]} {
    %c0 = arith.constant 0 : index
    %c0_0 = arith.constant 0 : index
    %0 = vector.load %arg2[%c0, %c0_0] : memref<8x128xf32, #tpu.memory_space<vmem>>, vector<8x128xf32>
    %cst = arith.constant 3.000000e+01 : f32
    %1 = vector.broadcast %cst : f32 to vector<8x128xf32>
    %2 = arith.mulf %1, %0 : vector<8x128xf32>
    %3 = math.sin %2 : vector<8x128xf32>
    %c0_1 = arith.constant 0 : index
    %c0_2 = arith.constant 0 : index
    %4 = vector.load %arg3[%c0_1, %c0_2] : memref<8x128xf32, #tpu.memory_space<vmem>>, vector<8x128xf32>
    tpu.vector_store %arg3[%c0_1, %c0_2], %3 {strides = array<i32>} : memref<8x128xf32, #tpu.memory_space<vmem>>, vector<8x128xf32>,
    return
  }
  func.func @transform_0(%arg0: i32, %arg1: i32) -> (i32, i32) {
    %c0_i32 = arith.constant 0 : i32
    return %arg0, %arg1 : i32, i32
  }
  func.func @transform_1(%arg0: i32, %arg1: i32) -> (i32, i32) {
    %c0_i32 = arith.constant 0 : i32
    return %arg0, %arg1 : i32, i32
  }
}

</mosaic_0001>

<bundles_post_ra>
// kernel: tpu_custom_call.1
= control target key start
LH: loop header
LB: loop body
LE: loop exit
PB: predicated region body
PF: predicated region fallthrough
CT: control target
= control target key end

     0   :  { %6 = vsyncpa [#allocation3], 0  ;;  %s777_s0 = inlined_call_operand.hbm [shape: f32[8,256], index: 0, kind: input, shape index: {}]   ;;  %s778_s1 = inlined_call_operand.hbm [shape: f32[8,256], index: 1, kind: output, shape index: {}]  }
   0x1   :  { %8 = vsyncpa [#allocation3 + $0x1], 0 }
   0x2   :  { %9 = vsyncpa [#allocation4], 0 }
   0x3   :  { %11 = vsyncpa [#allocation4 + $0x1], 0  ;;  %s580_s6 = smov 0   ;;  %s582_s7 = smov 0  }
   0x4   :  { %s584_s8 = smov 0   ;;  %s586_s9 = smov 0  }
   0x5   :  { %s588_s10 = smov 0   ;;  %s590_s11 = smov 0  }
   0x6 LB: > { %s355_s12 = sadd.s32 4294967295, %s560_s11   ;;  %s356_s13 = sadd.s32 4294967294, %s560_s11   ;;  %s560_s11 = sphi %s590_s11, %s17_s11   ;;  %s556_s10 = sphi %s588_s10, %s794_s10   ;;  %s552_s9 = sphi %s586_s9, %s793_s9   ;;  %s548_s8 = sphi %s584_s8, %s792_s8   ;;  %s544_s7 = sphi %s582_s7, %s791_s7   ;;  %s540_s6 = sphi %s580_s6, %s790_s6  }
   0x7   : > { %s26_s14 = sadd.s32 1, %s556_s10  ;;  %s38_s15 = sadd.s32 1, %s548_s8 }
   0x8   : > { %p27_p0 = scmp.ge.s32.totalorder %s26_s14, 2  ;;  %p45_p1 = scmp.ne.s32.totalorder %s548_s8, %s544_s7 }
   0x9   : > { %p46_p2 = scmp.eq.s32.totalorder %s560_s11, 0  ;;  %p51_p3 = scmp.ne.s32.totalorder %s544_s7, %s540_s6 }
   0xa   : > { %s796_s14 = smov (%p27_p0, %s26_s14), 0  ;;  %p52_p5 = scmp.eq.s32.totalorder %s355_s12, 0 }
   0xb   : > { %p621_p4 = por %p46_p2, %p45_p1  ;;  %s34_s17 = ssub.s32 %s556_s10, %s796_s14 }
   0xc   : > { %p77_p6 = scmp.eq.s32.totalorder %s355_s12, 1  ;;  %p36_p7 = scmp.eq.s32.totalorder %s34_s17, 0 }
   0xd   : > { %p627_p8 = por %p52_p5, %p51_p3  ;;  %p83_p10 = scmp.eq.s32.totalorder %s356_s13, 1 }
   0xe   : > { %p631_p9 = por %p77_p6, %p45_p1  ;;  %p388_p13 = scmp.lt.s32.totalorder %s560_s11, 2 }
   0xf   : > { %s636_s20 = scalar_select %p36_p7, %s548_s8, %s38_s15  }
  0x10   : > { %s782_s19 = scalar_select %p631_p9, 1, 0 }
  0x11   : > { %p638_p11 = por %p83_p10, %p51_p3  ;;  %s103_s22 = sand.u32 1, %s548_s8  }
  0x12   : > { %s359_s23 = sshll.u32 %s103_s22, 3  ;;  %s360_s24 = sshll.u32 %s556_s10, 7 }
  0x13   : > { %s783_s21 = scalar_select %p638_p11, 1, 0 }
  0x14   : > { %s649_s27 = scalar_lea.hbm %s777_s0, %s360_s24  ;;  %s107_s28 = scalar_lea.vmem [#allocation2], %s359_s23 }
  0x15   : > { %s116_s29 = sshll.u32 %s107_s28, 4  ;;  %p655_p0 = pnand %p388_p13, %p621_p4  ;;  %s651_s29 = int_to_ptr.vmem [resolvable:$true] %s116_s29 }
  0x16   : > { %s104_s2 = scalar_lea.sflag [#allocation3], %s103_s22  ;;  %s448_s3 = scalar_lea.hbm %s649_s27, 128 }
  0x17   : > { %p449_p3 = scmp.ne.s32.totalorder %s649_s27, %s448_s3  ;;  %p450_p5 = pneg %p655_p0 }
  0x18   : > { %s453_s12 = scalar_lea.hbm %s777_s0, 256  ;;  %p454_p4 = scmp.lt.u32.totalorder %s649_s27, %s777_s0 }
  0x19   : > { %p451_p6 = pnand %p450_p5, %p449_p3  ;;  %p455_p10 = scmp.lt.u32.totalorder %s453_s12, %s448_s3 }
  0x1a   : > { %p457_p12 = scmp.lt.u32.totalorder %s448_s3, %s649_s27 }
  0x1b   : > { %p452_p7 = pneg %p451_p6  ;;  %p456_p13 = por %p455_p10, %p454_p4 }
  0x1d   : > { %p458_p1 = por %p457_p12, %p456_p13 }
  0x1f   : > { %p459_p2 = pnand %p458_p1, %p452_p7 }
  0x21   : > { %462 = shalt.err (!%p459_p2)
}
  0x22   : > { %s463_s16 = scalar_lea.vmem %s651_s29, 128  ;;  %s562_s17 = smov [#allocation2]  }
  0x23   : > { %p464_p3 = scmp.ne.s32.totalorder %s651_s29, %s463_s16  ;;  %s468_s22 = sshll.u32 %s562_s17, 4  ;;  %s469_s22 = int_to_ptr.vmem [resolvable:$false] %s468_s22 }
  0x24   : > { %s470_s23 = scalar_lea.vmem %s469_s22, 256  ;;  %p471_p9 = scmp.lt.s32.totalorder %s651_s29, %s469_s22 }
  0x25   : > { %p466_p6 = pnand %p464_p3, %p450_p5  ;;  %p472_p4 = scmp.lt.s32.totalorder %s470_s23, %s463_s16 }
  0x27   : > { %p467_p11 = pneg %p466_p6  ;;  %p473_p10 = por %p472_p4, %p471_p9 }
  0x29   : > { %p474_p12 = pnand %p473_p10, %p467_p11 }
  0x2b   : > { %477 = shalt.err (!%p474_p12)
}
  0x2c   : > { %383 = dma.hbm_to_vmem [thread:$0]  (!%p655_p0), %s649_s27, 128, %s651_s29, %s104_s2  }
  0x2d   : > { %p785_p1 = scmp.lt.s32.totalorder %s560_s11, 3  ;;  %p786_p2 = scmp.ge.s32.totalorder %s560_s11, 1 }
  0x2f   : > { %p122_p5 = pnand %p786_p2, %p785_p1 }
  0x30   : > { %s691_s24 = sand.u32 (!%p122_p5), 1, %s544_s7  }
  0x31   : > { %125 = sbr.rel (%p122_p5) target bundleno = 154 (0x9a), region = 24  ;;  %s362_s25 = sshll.u32 (!%p122_p5), %s691_s24, 3 }
  0x32   : > { %s128_s26 = scalar_lea.sflag (!%p122_p5), [#allocation3], %s691_s24  ;;  %s131_s28 = scalar_lea.vmem (!%p122_p5), [#allocation2], %s362_s25 }
  0x38   : > { %531 = dma.done.wait (%p627_p8), %s128_s26, 128  }
  0x39   : > { %533 = vsyncadd (%p627_p8), %s128_s26, 4294967168  ;;  %v150_v0 = vld [vmem:[%s131_s28] sm:$0xff]  ;;  %v563_v13 = vmov 683565275   ;;  %v564_v15 = vmov 2475754826  }
  0x3a   : > { %v701_v1 = vmul.f32 30.0, %v150_v0  ;;  %v565_v17 = vmov 2131351028   ;;  %v566_v19 = vmov 2102212464   ;;  %s149_s18 = scalar_lea.vmem [#allocation5], %s362_s25 }
  0x3b   : > { %v567_v21 = vmov 920167782   ;;  %v568_v28 = vmov 1326507024   ;;  %s273_s27 = sshll.u32 %s149_s18, 4  ;;  %s369_s29 = sshll.u32 %s552_s9, 7  ;;  %s725_s27 = int_to_ptr.vmem [resolvable:$true] %s273_s27 }
  0x3c   : > { %v155_v2 = vand.u32 2139095040, %v701_v1  ;;  %v152_v4 = vand.u32 2147483647, %v701_v1  ;;  %vm154_vm7 = vcmp.lt.s32.totalorder %v701_v1, 0  ;;  %vm244_vm12 = vweird.f32 %v701_v1  ;;  %s730_s3 = scalar_lea.hbm %s778_s1, %s369_s29  ;;  %s258_s4 = scalar_lea.sflag [#allocation4], %s691_s24 }
  0x3d   : > { %s478_s5 = scalar_lea.vmem %s725_s27, 128  ;;  %p787_p9 = scmp.ne.s32.totalorder %s782_s19, 0 }
  0x3e   : > { %v156_v3 = vshrl.u32 %v155_v2, 23  ;;  %v159_v7 = vand.u32 8388607, %v152_v4  ;;  %vm153_vm8 = vcmp.le.f32.partialorder %v152_v4, 0.7853982  ;;  %p479_p8 = scmp.ne.s32.totalorder %s725_s27, %s478_s5  ;;  %s569_s9 = smov [#allocation5]  }
  0x3f   : > { %s482_s12 = sshll.u32 %s569_s9, 4  ;;  %s483_s12 = int_to_ptr.vmem [resolvable:$false] %s482_s12 }
  0x40   : > { %v364_v5 = vadd.s32 4294967169, %v156_v3  ;;  %v160_v10 = vor.u32 8388608, %v159_v7  ;;  %p480_p11 = pnand %p479_p8, %p787_p9  ;;  %s484_s13 = scalar_lea.vmem %s483_s12, 256 }
  0x41   : > { %p485_p7 = scmp.lt.s32.totalorder %s725_s27, %s483_s12  ;;  %p486_p13 = scmp.lt.s32.totalorder %s484_s13, %s478_s5 }
  0x42   : > { %v162_v6 = vadd.s32 1, %v364_v5  ;;  %v200_v30 = vshll.u32 %v160_v10, 8  ;;  %p481_p0 = pneg %p480_p11 }
  0x43   : > { %p487_p3 = por %p486_p13, %p485_p7 }
  0x44   : > { %vm163_vm0 = vcmp.gt.s32.totalorder %v162_v6, 0 }
  0x45   : > { %v164_v8 = vsel %vm163_vm0, %v162_v6, 0  ;;  %p488_p6 = pnand %p487_p3, %p481_p0 }
  0x46   : > { %v166_v9 = vand.u32 31, %v164_v8  ;;  %v165_v11 = vshrl.u32 %v164_v8, 5 }
  0x48   : > { %v167_v12 = vsub.s32 32, %v166_v9  ;;  %v169_v14 = vshll.u32 %v563_v13, %v166_v9  ;;  %v172_v16 = vshll.u32 %v564_v15, %v166_v9  ;;  %v175_v18 = vshll.u32 %v565_v17, %v166_v9 }
  0x49   : > { %v178_v20 = vshll.u32 %v566_v19, %v166_v9  ;;  %v181_v22 = vshll.u32 %v567_v21, %v166_v9  ;;  %vm184_vm1 = vcmp.lt.s32.totalorder %v165_v11, 1  ;;  %vm187_vm2 = vcmp.lt.s32.totalorder %v165_v11, 4 }
  0x4a   : > { %v168_v23 = vshrl.u32 %v563_v13, %v167_v12  ;;  %v170_v24 = vshrl.u32 %v564_v15, %v167_v12  ;;  %v173_v25 = vshrl.u32 %v565_v17, %v167_v12  ;;  %v176_v26 = vshrl.u32 %v566_v19, %v167_v12 }
  0x4b   : > { %v179_v27 = vshrl.u32 %v567_v21, %v167_v12  ;;  %v182_v29 = vshrl.u32 %v568_v28, %v167_v12  ;;  %vm185_vm3 = vcmp.lt.s32.totalorder %v165_v11, 2  ;;  %vm186_vm4 = vcmp.lt.s32.totalorder %v165_v11, 3 }
  0x4c   : > { %v171_v31 = vor.u32 %v170_v24, %v169_v14  ;;  %v174_v32 = vor.u32 %v173_v25, %v172_v16  ;;  %v177_v33 = vor.u32 %v176_v26, %v175_v18 }
  0x4d   : > { %v180_v34 = vor.u32 %v179_v27, %v178_v20  ;;  %v183_v35 = vor.u32 %v182_v29, %v181_v22 }
  0x4e   : > { %v188_v36 = vsel %vm184_vm1, %v168_v23, %v171_v31  ;;  %v189_v37 = vsel %vm187_vm2, %v177_v33, 2102212464  ;;  %v192_v38 = vsel %vm184_vm1, %v171_v31, %v174_v32  ;;  %v196_v39 = vsel %vm184_vm1, %v174_v32, %v177_v33 }
  0x4f   : > { %v190_v40 = vsel %vm186_vm4, %v174_v32, %v189_v37  ;;  %v193_v41 = vsel %vm187_vm2, %v180_v34, 920167782  ;;  %v197_v42 = vsel %vm187_vm2, %v183_v35, 1326507024 }
  0x50   : > { %v194_v43 = vsel %vm186_vm4, %v177_v33, %v193_v41  ;;  %v198_v44 = vsel %vm186_vm4, %v180_v34, %v197_v42  ;;  %v191_v45 = vsel %vm185_vm3, %v188_v36, %v190_v40 }
  0x51   : > { %v195_v46 = vsel %vm185_vm3, %v192_v38, %v194_v43  ;;  %v199_v47 = vsel %vm185_vm3, %v196_v39, %v198_v44  ;;  %v207_v52 = vmul.u32 %v200_v30, %v191_v45 }
  0x52   : > { %v707_v48 = vmul.u32.u64.low %v200_v30, %v199_v47  ;;  %v708_v49 = vmul.u32.u64.high %v200_v30, %v199_v47, %v707_v48  ;;  %v710_v50 = vmul.u32.u64.low %v200_v30, %v195_v46  ;;  %v711_v51 = vmul.u32.u64.high %v200_v30, %v195_v46, %v710_v50 }
  0x54   : > { %vm209_vm5 = vc.u32 %v708_v49, %v710_v50  ;;  %v210_v53 = vadd.s32 1, %v711_v51  ;;  %v208_v0 = vadd.s32 %v710_v50, %v708_v49 }
  0x56   : > { %v211_v54 = vsel %vm209_vm5, %v210_v53, %v711_v51 }
  0x57   : > { %v212_v55 = vadd.s32 %v211_v54, %v207_v52 }
  0x59   : > { %v213_v56 = vadd.s32 536870912, %v212_v55 }
  0x5b   : > { %v214_v57 = vshrl.u32 %v213_v56, 30 }
  0x5d   : > { %v215_v58 = vshll.u32 %v214_v57, 30  ;;  %v238_v14 = vsub.s32 4, %v214_v57 }
  0x5f   : > { %v216_v59 = vsub.s32 %v212_v55, %v215_v58  ;;  %v239_v17 = vsel %vm154_vm7, %v238_v14, %v214_v57 }
  0x60   : > { %v241_v20 = vsel %vm153_vm8, 0, %v239_v17 }
  0x61   : > { %v218_v60 = vsub.s32 0, %v216_v59  ;;  %v245_v21 = vadd.s32 3, %v241_v20 }
  0x63   : > { %v365_v61 = vmin.u32 %v218_v60, %v216_v59  ;;  %v246_v22 = vand.u32 3, %v245_v21 }
  0x65   : > { %v220_v62 = vclz %v365_v61  ;;  %vm251_vm9 = vcmp.eq.s32.totalorder %v246_v22, 2  ;;  %vm248_vm10 = vcmp.eq.s32.totalorder %v246_v22, 0  ;;  %vm247_vm11 = vcmp.lt.s32.totalorder %v246_v22, 2 }
  0x67   : > { %v366_v63 = vadd.s32 4294967294, %v220_v62 }
  0x69   : > { %vm367_vm6 = vcmp.lt.s32.totalorder %v366_v63, 0 }
  0x6a   : > { %v223_v2 = vsel %vm367_vm6, 0, %v366_v63 }
  0x6b   : > { %v224_v3 = vsub.s32 32, %v223_v2  ;;  %v225_v5 = vshll.u32 %v216_v59, %v223_v2  ;;  %v228_v6 = vsub.s32 4294967266, %v223_v2 }
  0x6d   : > { %v226_v7 = vshrl.u32 %v208_v0, %v224_v3  ;;  %v229_v8 = vadd.s32 127, %v228_v6 }
  0x6f   : > { %v227_v9 = vor.u32 %v226_v7, %v225_v5  ;;  %v230_v10 = vshll.u32 %v229_v8, 23 }
  0x71   : > { %v231_v11 = vor.u32 4788187, %v230_v10  ;;  %v234_v12 = vcvt.s32.f32 %v227_v9 }
  0x73   : > { %v232_v13 = vand.u32 2147483647, %v231_v11 }
  0x75   : > { %v235_v15 = vmul.f32 %v234_v12, %v232_v13 }
  0x77   : > { %v236_v16 = vxor.u32 2147483648, %v235_v15 }
  0x79   : > { %v237_v18 = vsel %vm154_vm7, %v236_v16, %v235_v15 }
  0x7a   : > { %v240_v19 = vsel %vm153_vm8, %v701_v1, %v237_v18 }
  0x7b   : > { %444 = vcosq.f32 %v240_v19 }
  0x7c   : > { %446 = vsinq.f32 %v240_v19 }
  0x85   : > { %v445_v23 = vpop.eup %444 }
  0x86   : > { %v447_v24 = vpop.eup %446  ;;  %v252_v25 = vxor.u32 2147483648, %v445_v23 }
  0x87   : > { %v249_v4 = vxor.u32 2147483648, %v447_v24 }
  0x88   : > { %v253_v26 = vsel %vm251_vm9, %v252_v25, %v447_v24 }
  0x89   : > { %v250_v27 = vsel %vm248_vm10, %v445_v23, %v249_v4 }
  0x8a   : > { %v254_v28 = vsel %vm247_vm11, %v250_v27, %v253_v26 }
  0x8b   : > { %v255_v29 = vsel %vm244_vm12, nan, %v254_v28 }
  0x8c   : > { %256 = vst [vmem:[%s149_s18] sm:$0xff] %v255_v29 }
  0x8d   : > { %491 = shalt.err (!%p488_p6)
}
  0x8e   : > { %s492_s15 = scalar_lea.hbm %s730_s3, 128  ;;  %s496_s22 = scalar_lea.hbm %s778_s1, 256 }
  0x8f   : > { %p493_p4 = scmp.ne.s32.totalorder %s730_s3, %s492_s15  ;;  %p497_p1 = scmp.lt.u32.totalorder %s730_s3, %s778_s1 }
  0x90   : > { %p498_p2 = scmp.lt.u32.totalorder %s496_s22, %s492_s15  ;;  %p500_p8 = scmp.lt.u32.totalorder %s492_s15, %s730_s3 }
  0x91   : > { %p494_p10 = pnand %p493_p4, %p787_p9 }
  0x92   : > { %p499_p5 = por %p498_p2, %p497_p1 }
  0x93   : > { %p495_p12 = pneg %p494_p10 }
  0x94   : > { %p501_p11 = por %p500_p8, %p499_p5 }
  0x96   : > { %p502_p0 = pnand %p501_p11, %p495_p12 }
  0x98   : > { %505 = shalt.err (!%p502_p0)
}
  0x99   : > { %378 = dma.vmem_to_hbm [thread:$0]  (%p787_p9), %s725_s27, 128, %s730_s3, %s258_s4  }
  0x9a PF: > { %s285_s25 = sand.u32 1, %s540_s6   ;;  %p788_p7 = scmp.ne.s32.totalorder %s783_s21, 0 }
  0x9b   : > { %p789_p13 = scmp.ge.s32.totalorder %s560_s11, 2  ;;  %s286_s26 = scalar_lea.sflag [#allocation4], %s285_s25 }
  0x9d   : > { %p385_p3 = pnand %p789_p13, %p788_p7 }
  0x9f   : > { %535 = dma.done.wait (!%p385_p3), %s286_s26, 128  }
  0xa0   : > { %537 = vsyncadd (!%p385_p3), %s286_s26, 4294967168  ;;  %s17_s11 = sadd.s32 1, %s560_s11   ;;  %s790_s6 = smov %s544_s7 }
  0xa1   : > { %p14_p6 = scmp.ge.s32.totalorder %s17_s11, 4   ;;  %s791_s7 = smov %s548_s8 }
  0xa2   : > { %s792_s8 = smov %s636_s20  ;;  %s793_s9 = smov %s556_s10 }
  0xa3   : > { %s794_s10 = smov %s796_s14  ;;  %16 = sbr.rel (!%p14_p6) target bundleno = 6 (0x6), region = 69 }
  0xaa   :  { %291 = vsyncpa [#allocation3], 1 }
  0xab   :  { %293 = vsyncpa [#allocation3 + $0x1], 1 }
  0xac   :  { %294 = vsyncpa [#allocation4], 1 }
  0xad   :  { %296 = vsyncpa [#allocation4 + $0x1], 1 }

</bundles_post_ra>
